<compile_context>
chip_gen: v5e
topology: v5e:2x2
jax: 0.10.0
libtpu: 0.0.40
codegen_flags: <defaults>
</compile_context>

<pallas_src>
import jax
import jax.numpy as jnp
from jax.experimental import pallas as pl
from jax.experimental.pallas import tpu as pltpu

IN_FEATURES = 4
OUT_FEATURES = 4


def _linear_kernel(x_ref, p_ref, o_ref):
    # x_ref: (tile_b, IN); p_ref: (IN+1, OUT) = [W^T ; bias]; o_ref: (tile_b, OUT)
    x = x_ref[...]
    p = p_ref[...]
    n_rows, n_in = x.shape
    n_out = p.shape[1]
    # bias row broadcast to every output row (accumulator init)
    acc = jnp.broadcast_to(p[n_in:n_in + 1, :], (n_rows, n_out)).astype(jnp.float32)
    # 4-step VPU unroll of y += x[:, k] * W^T[k, :]  (no MXU push/pop latency)
    for k in range(n_in):
        acc = acc + x[:, k:k + 1].astype(jnp.float32) * p[k:k + 1, :].astype(jnp.float32)
    o_ref[...] = acc.astype(o_ref.dtype)


def _pack_params(weight, bias, dtype):
    # weight: (OUT, IN) PyTorch layout; bias: (OUT,)
    # packed: (IN+1, OUT) with rows 0..IN-1 = W^T, last row = bias
    return jnp.concatenate([weight.T, bias.reshape(1, -1)], axis=0).astype(dtype)


def linear_pallas(x, weight, bias, *, batch_tile=512):
    """x: (B, IN); weight: (OUT, IN) PyTorch convention; bias: (OUT,)."""
    B, IN = x.shape
    OUT = weight.shape[0]
    dtype = x.dtype
    packed = _pack_params(weight, bias, dtype)  # (IN+1, OUT)

    if B <= batch_tile:
        # Grid-less: whole arrays resident in VMEM; this regime is bounded by
        # dispatch + tiny DMAs, so no pipeline bookkeeping at all.
        Bp = max(8, ((B + 7) // 8) * 8)  # keep sublane dim a multiple of 8
        xp = x if Bp == B else jnp.pad(x, ((0, Bp - B), (0, 0)))
        out = pl.pallas_call(
            _linear_kernel,
            out_shape=jax.ShapeDtypeStruct((Bp, OUT), dtype),
            in_specs=[
                pl.BlockSpec(memory_space=pltpu.MemorySpace.VMEM),
                pl.BlockSpec(memory_space=pltpu.MemorySpace.VMEM),
            ],
            out_specs=pl.BlockSpec(memory_space=pltpu.MemorySpace.VMEM),
        )(xp, packed)
        return out[:B] if Bp != B else out

    # Batched-grid path: parameters stay VMEM-resident (index_map -> (0,0));
    # per-call overhead and the params DMA amortize over all batch tiles.
    n_tiles = pl.cdiv(B, batch_tile)
    Bp = n_tiles * batch_tile
    xp = x if Bp == B else jnp.pad(x, ((0, Bp - B), (0, 0)))
    semantics = ("parallel",) if n_tiles >= 2 else ("arbitrary",)
    out = pl.pallas_call(
        _linear_kernel,
        out_shape=jax.ShapeDtypeStruct((Bp, OUT), dtype),
        grid=(n_tiles,),
        in_specs=[
            pl.BlockSpec((batch_tile, IN), lambda i: (i, 0)),
            pl.BlockSpec((IN + 1, OUT), lambda i: (0, 0)),
        ],
        out_specs=pl.BlockSpec((batch_tile, OUT), lambda i: (i, 0)),
        compiler_params=pltpu.CompilerParams(dimension_semantics=semantics),
    )(xp, packed)
    return out[:B] if Bp != B else out


if __name__ == "__main__":
    key = jax.random.PRNGKey(0)
    kx, kw, kb, kx2 = jax.random.split(key, 4)

    B, IN, OUT = 8, IN_FEATURES, OUT_FEATURES
    x = jax.random.normal(kx, (B, IN), dtype=jnp.float32)

    # Deterministic parameter init (mimics nn.Linear's uniform(-1/sqrt(in), 1/sqrt(in)))
    bound = 1.0 / jnp.sqrt(jnp.float32(IN))
    weight = jax.random.uniform(kw, (OUT, IN), minval=-bound, maxval=bound,
                                dtype=jnp.float32)
    bias = jax.random.uniform(kb, (OUT,), minval=-bound, maxval=bound,
                              dtype=jnp.float32)

    # Small batch: grid-less path.
    out = linear_pallas(x, weight, bias)
    out = jax.block_until_ready(out)
    ref = x @ weight.T + bias
    assert out.shape == (B, OUT)
    assert jnp.allclose(out, ref, atol=1e-5, rtol=1e-5)

    # Larger batch: batched-grid path with VMEM-resident packed params.
    B2 = 1540  # intentionally not a multiple of the 512-row tile
    x2 = jax.random.normal(kx2, (B2, IN), dtype=jnp.float32)
    out2 = jax.block_until_ready(linear_pallas(x2, weight, bias))
    ref2 = x2 @ weight.T + bias
    assert out2.shape == (B2, OUT)
    assert jnp.allclose(out2, ref2, atol=1e-5, rtol=1e-5)

    print("KERNEL_OK")
</pallas_src>

<mosaic_0001>
module attributes {stable_mosaic.version = 11 : i64} {
  func.func @_linear_kernel(%arg0: memref<8x4xf32, #tpu.memory_space<vmem>>, %arg1: memref<5x4xf32, #tpu.memory_space<vmem>>, %arg2: memref<8x4xf32, #tpu.memory_space<vmem>>) attributes {dimension_semantics = [], scalar_prefetch = 0 : i64, scratch_operands = 0 : i64, tpu.core_type = #tpu.core_type<tc>} {
    %c0 = arith.constant 0 : index
    %c0_0 = arith.constant 0 : index
    %0 = vector.load %arg0[%c0, %c0_0] : memref<8x4xf32, #tpu.memory_space<vmem>>, vector<8x4xf32>
    %c0_1 = arith.constant 0 : index
    %c0_2 = arith.constant 0 : index
    %1 = vector.load %arg1[%c0_1, %c0_2] : memref<5x4xf32, #tpu.memory_space<vmem>>, vector<5x4xf32>
    %2 = vector.extract_strided_slice %1 {offsets = [4, 0], sizes = [1, 4], strides = [1, 1]} : vector<5x4xf32> to vector<1x4xf32>
    %3 = vector.shape_cast %2 : vector<1x4xf32> to vector<1x4xf32>
    %4 = vector.broadcast %3 : vector<1x4xf32> to vector<8x4xf32>
    %5 = vector.extract_strided_slice %0 {offsets = [0, 0], sizes = [8, 1], strides = [1, 1]} : vector<8x4xf32> to vector<8x1xf32>
    %6 = vector.extract_strided_slice %1 {offsets = [0, 0], sizes = [1, 4], strides = [1, 1]} : vector<5x4xf32> to vector<1x4xf32>
    %7 = vector.broadcast %5 : vector<8x1xf32> to vector<8x4xf32>
    %8 = vector.broadcast %6 : vector<1x4xf32> to vector<8x4xf32>
    %9 = arith.mulf %7, %8 : vector<8x4xf32>
    %10 = arith.addf %4, %9 : vector<8x4xf32>
    %11 = vector.extract_strided_slice %0 {offsets = [0, 1], sizes = [8, 1], strides = [1, 1]} : vector<8x4xf32> to vector<8x1xf32>
    %12 = vector.extract_strided_slice %1 {offsets = [1, 0], sizes = [1, 4], strides = [1, 1]} : vector<5x4xf32> to vector<1x4xf32>
    %13 = vector.broadcast %11 : vector<8x1xf32> to vector<8x4xf32>
    %14 = vector.broadcast %12 : vector<1x4xf32> to vector<8x4xf32>
    %15 = arith.mulf %13, %14 : vector<8x4xf32>
    %16 = arith.addf %10, %15 : vector<8x4xf32>
    %17 = vector.extract_strided_slice %0 {offsets = [0, 2], sizes = [8, 1], strides = [1, 1]} : vector<8x4xf32> to vector<8x1xf32>
    %18 = vector.extract_strided_slice %1 {offsets = [2, 0], sizes = [1, 4], strides = [1, 1]} : vector<5x4xf32> to vector<1x4xf32>
    %19 = vector.broadcast %17 : vector<8x1xf32> to vector<8x4xf32>
    %20 = vector.broadcast %18 : vector<1x4xf32> to vector<8x4xf32>
    %21 = arith.mulf %19, %20 : vector<8x4xf32>
    %22 = arith.addf %16, %21 : vector<8x4xf32>
    %23 = vector.extract_strided_slice %0 {offsets = [0, 3], sizes = [8, 1], strides = [1, 1]} : vector<8x4xf32> to vector<8x1xf32>
    %24 = vector.extract_strided_slice %1 {offsets = [3, 0], sizes = [1, 4], strides = [1, 1]} : vector<5x4xf32> to vector<1x4xf32>
    %25 = vector.broadcast %23 : vector<8x1xf32> to vector<8x4xf32>
    %26 = vector.broadcast %24 : vector<1x4xf32> to vector<8x4xf32>
    %27 = arith.mulf %25, %26 : vector<8x4xf32>
    %28 = arith.addf %22, %27 : vector<8x4xf32>
    %c0_3 = arith.constant 0 : index
    %c0_4 = arith.constant 0 : index
    %29 = vector.load %arg2[%c0_3, %c0_4] : memref<8x4xf32, #tpu.memory_space<vmem>>, vector<8x4xf32>
    tpu.vector_store %arg2[%c0_3, %c0_4], %28 {strides = array<i32>} : memref<8x4xf32, #tpu.memory_space<vmem>>, vector<8x4xf32>,
    return
  }
}

</mosaic_0001>

<bundles_post_ra>
// kernel: tpu_custom_call.1
= control target key start
LH: loop header
LB: loop body
LE: loop exit
PB: predicated region body
PF: predicated region fallthrough
CT: control target
= control target key end

     0   :  { %v58_v0 = vmov 0   ;;  %v59_v2 = vmov 2   ;;  %v60_v3 = vmov 1   ;;  %v61_v4 = vmov 3   ;;  %s86_s0 = inlined_call_operand.vmem [shape: f32[8,4], index: 0, kind: input, shape index: {}]   ;;  %s87_s1 = inlined_call_operand.vmem [shape: f32[5,4], index: 1, kind: input, shape index: {}]   ;;  %s88_s2 = inlined_call_operand.vmem [shape: f32[8,4], index: 2, kind: output, shape index: {}]  }
   0x1   :  { %53 = vset.pattern.permute.xlu0 %v58_v0  ;;  %v11_v1 = vld [vmem:[%s86_s0] sm:$0xff]  ;;  %55 = vset.pattern.permute.xlu1 %v59_v2  ;;  %vm43_vm0 = vcmask 31744  }
   0x2   :  { %16 = vperm.xlu0 %53, %v11_v1   ;;  %30 = vperm.xlu1 %55, %v11_v1   ;;  %v12_v5 = vld [vmem:[%s87_s1] sm:$0x1f] }
   0x3   :  { %v19_v8 = vperm.slane %v12_v5, 0  ;;  %v13_v9 = vperm.slane %v12_v5, 4  ;;  %v26_v11 = vperm.slane %v12_v5, 1  ;;  %v33_v12 = vperm.slane %v12_v5, 2 }
   0x4   :  { %v40_v13 = vperm.slane %v12_v5, 3 }
   0xa   :  { %54 = vset.pattern.permute.xlu0 %v60_v3  ;;  %56 = vset.pattern.permute.xlu1 %v61_v4 }
   0xb   :  { %23 = vperm.xlu0 %54, %v11_v1   ;;  %37 = vperm.xlu1 %56, %v11_v1  }
  0x13   :  { %57 = vset.pattern.permute.xlu0 %v61_v4 }
  0x74   :  { %v17_v6 = vpop.permute.xlu0 %16  ;;  %v31_v7 = vpop.permute.xlu1 %30 }
  0x75   :  { %v20_v10 = vmul.f32 %v19_v8, %v17_v6  ;;  %v34_v18 = vmul.f32 %v33_v12, %v31_v7 }
  0x77   :  { %v21_v16 = vadd.f32 %v20_v10, %v13_v9 }
  0x7d   :  { %v24_v14 = vpop.permute.xlu0 %23  ;;  %v38_v15 = vpop.permute.xlu1 %37 }
  0x7e   :  { %v27_v17 = vmul.f32 %v26_v11, %v24_v14  ;;  %v41_v20 = vmul.f32 %v40_v13, %v38_v15 }
  0x80   :  { %v28_v19 = vadd.f32 %v27_v17, %v21_v16 }
  0x82   :  { %v35_v21 = vadd.f32 %v34_v18, %v28_v19 }
  0x84   :  { %v42_v22 = vadd.f32 %v41_v20, %v35_v21 }
  0x86   :  { %44 = vst.msk [vmem:[%s88_s2] sm:$0xff] %vm43_vm0, %v42_v22 }

</bundles_post_ra>
